<compile_context>
chip_gen: v5e
topology: v5e:2x2
jax: 0.10.0
libtpu: 0.0.40
codegen_flags: <defaults>
</compile_context>

<pallas_src>
import functools

import jax
import jax.numpy as jnp
from jax import lax
from jax.experimental import pallas as pl
from jax.experimental.pallas import tpu as pltpu

# ----------------------------- hyper-params ---------------------------------
HIDDEN = 20
L1_PEN = 0.05
ALPHA = 20.0
RHO = 0.0002
META_STEP = 3
LR = 0.002


# --------------------- shared math (kernel + JAX twin) -----------------------
def _matrix_power(A, e):
    """A^e for a static int e >= 1 via exponentiation-by-squaring."""
    assert e >= 1
    result = None
    base = A
    while e > 0:
        if e & 1:
            result = base if result is None else jnp.dot(
                result, base, preferred_element_type=jnp.float32)
        e >>= 1
        if e:
            base = jnp.dot(base, base, preferred_element_type=jnp.float32)
    return result


def _pow_matmul_count(e):
    if e <= 1:
        return 0
    return (e.bit_length() - 1) + (bin(e).count("1") - 1)


def _round_up(x, m):
    return (x + m - 1) // m * m


# ----------------------------- Pallas kernel --------------------------------
def _cae_loss_kernel(xt_ref, p_ref, out_ref, acc_ref, *,
                     n, d, hidden, tile_n, w1_r0, w2_r0):
    i = pl.program_id(0)
    last = pl.num_programs(0) - 1

    # ---- parameter views out of the packed slab (static slices) ----
    BmT = p_ref[0:d, 0:d]                            # (d, d), diag pre-zeroed
    W1T = p_ref[w1_r0:w1_r0 + hidden, 0:d]           # (hidden, d)
    b1c = p_ref[w1_r0:w1_r0 + hidden, d:d + 1]       # (hidden, 1)
    W2T = p_ref[w2_r0:w2_r0 + d, 0:hidden]           # (d, hidden)
    b2c = p_ref[w2_r0:w2_r0 + d, hidden:hidden + 1]  # (d, 1)

    xt = xt_ref[...]                                 # (d, tile_n) lane-dense

    # ---- decoder MLP, transposed: sample axis rides the 128-lane axis ----
    zt = jnp.dot(BmT, xt, preferred_element_type=jnp.float32)          # (d, T)
    hdn = jnp.maximum(
        jnp.dot(W1T, zt, preferred_element_type=jnp.float32) + b1c, 0.0)  # (H, T)
    xhat = jnp.dot(W2T, hdn, preferred_element_type=jnp.float32) + b2c    # (d, T)
    # NOTE: xhat is never written back to HBM -- Learner.forward discards it.

    diff = xt - xhat
    sq = diff * diff

    @pl.when(i == 0)
    def _init():
        acc_ref[...] = jnp.zeros_like(acc_ref)

    # Vector-shaped partial sums: per-step work stays on the VPU; the single
    # cross-lane XLU reduce is deferred to the last grid step.
    if tile_n % 128 == 0:
        part = sq[:, 0:128]
        for k in range(1, tile_n // 128):
            part = part + sq[:, k * 128:(k + 1) * 128]
        acc_ref[...] = acc_ref[...] + part
    else:
        # Only reachable when grid == 1 (tile_n == n, n not 128-aligned).
        rmask = lax.broadcasted_iota(jnp.int32, (d, 128), 0) == 0
        cmask = lax.broadcasted_iota(jnp.int32, (d, 128), 1) == 0
        acc_ref[...] = acc_ref[...] + jnp.where(rmask & cmask, jnp.sum(sq), 0.0)

    # ---- finalize once, on the last sample tile ----
    @pl.when(i == last)
    def _finalize():
        # Acyclicity computed from Bm^T (trace is transpose-invariant) and L1.
        # Kept in-kernel: with a single grid step there is no DMA left to
        # overlap against, and hoisting these tiny (d,d) matmuls to XLA just
        # trades an MXU tail for an extra fusion + scalar plumbing.
        ii = lax.broadcasted_iota(jnp.int32, (d, d), 0)
        jj = lax.broadcasted_iota(jnp.int32, (d, d), 1)
        diag = ii == jj
        A = jnp.where(diag, 1.0, 0.0) + (BmT * BmT) * (1.0 / d)
        M = _matrix_power(A, d)                       # O(log d) matmuls
        h = jnp.sum(jnp.where(diag, M, 0.0)) - float(d)

        rec = 0.5 * jnp.sum(acc_ref[...]) * (1.0 / n)
        l1 = L1_PEN * jnp.sum(jnp.abs(BmT))
        loss = rec + l1 + ALPHA * h + 0.5 * RHO * h * h

        # Pack both scalars into one lane-dense (1, 128) row: a single
        # unmasked vst + one tiny writeback instead of two (1,1) outputs.
        lane = lax.broadcasted_iota(jnp.int32, (1, 128), 1)
        out_ref[...] = jnp.where(lane == 0, loss,
                                 jnp.where(lane == 1, h, 0.0))


# ----------------------------- wrapper ---------------------------------------
def _pick_tile_n(n, d):
    """Lane tile over the sample axis; whole array whenever it fits."""
    bytes_per_col = d * 4
    # Keep one X^T buffer <= ~8 MiB (BlockSpec double-buffers it) so the
    # kernel stays well inside v7x's 32 MiB scoped VMEM on every generation.
    budget_cols = max(128, (8 * 1024 * 1024) // bytes_per_col)
    if n <= budget_cols:
        return n                       # single grid step: whole X^T resident
    for t in (8192, 4096, 2048, 1024, 512, 256, 128):
        if t <= budget_cols and n % t == 0:
            return t
    return n                           # odd n: full-array block (always legal)


def _pack_params(params, d, hidden):
    """Pack B^T (diag-masked), W1^T, b1, W2^T, b2 into one (rows, 128) slab."""
    d_pad = _round_up(d, 8)
    h_pad = _round_up(hidden, 8)
    rows = d_pad + h_pad + d_pad
    slab = jnp.zeros((rows, 128), jnp.float32)
    eye = jnp.eye(d, dtype=jnp.float32)
    BmT = (params["B"] * (1.0 - eye)).T               # zero diag, transpose
    slab = slab.at[0:d, 0:d].set(BmT)
    w1_r0 = d_pad
    slab = slab.at[w1_r0:w1_r0 + hidden, 0:d].set(params["W1"].T)
    slab = slab.at[w1_r0:w1_r0 + hidden, d:d + 1].set(
        params["b1"].reshape(hidden, 1))
    w2_r0 = d_pad + h_pad
    slab = slab.at[w2_r0:w2_r0 + d, 0:hidden].set(params["W2"].T)
    slab = slab.at[w2_r0:w2_r0 + d, hidden:hidden + 1].set(
        params["b2"].reshape(d, 1))
    return slab, w1_r0, w2_r0


def cae_forward_pallas(params, x):
    """CAEModel forward hot path in Pallas. Returns (loss, h)."""
    n, d = x.shape
    hidden = params["W1"].shape[1]
    assert d + 1 <= 128 and hidden + 1 <= 128, "slab layout assumes d,hidden<128"

    tile_n = _pick_tile_n(n, d)
    xt = x.T                                           # layout plumbing only
    slab, w1_r0, w2_r0 = _pack_params(params, d, hidden)
    rows = slab.shape[0]

    kernel = functools.partial(_cae_loss_kernel, n=n, d=d, hidden=hidden,
                               tile_n=tile_n, w1_r0=w1_r0, w2_r0=w2_r0)

    mm = _pow_matmul_count(d)
    flops = (2 * n * d * d + 2 * n * d * hidden + 2 * n * hidden * d
             + mm * 2 * d ** 3 + 10 * n * d)
    bytes_accessed = 4 * (n * d + rows * 128 + 128)
    cost = pl.CostEstimate(flops=int(flops), transcendentals=0,
                           bytes_accessed=int(bytes_accessed))

    out = pl.pallas_call(
        kernel,
        out_shape=jax.ShapeDtypeStruct((1, 128), jnp.float32),
        grid_spec=pltpu.PrefetchScalarGridSpec(
            num_scalar_prefetch=0,
            grid=(n // tile_n,),
            in_specs=[
                pl.BlockSpec((d, tile_n), lambda i: (0, i)),   # X^T lane-dense
                pl.BlockSpec((rows, 128), lambda i: (0, 0)),   # packed params
            ],
            out_specs=pl.BlockSpec((1, 128), lambda i: (0, 0)),
            scratch_shapes=[pltpu.VMEM((d, 128), jnp.float32)],  # rec partials
        ),
        compiler_params=pltpu.CompilerParams(
            # grid axis carries the accumulator + resident output block.
            dimension_semantics=("arbitrary",),
            vmem_limit_bytes=32 * 1024 * 1024,
        ),
        cost_estimate=cost,
    )(xt, slab)
    return out[0, 0], out[0, 1]


# ------------------------ pure-JAX twin (for autodiff) -----------------------
def cae_loss_jax(params, x):
    """Pure-JAX twin of the Pallas forward (same masking / squaring, f32)."""
    n, d = x.shape
    B = params["B"]
    Bm = B * (1.0 - jnp.eye(d, dtype=B.dtype))
    z = x @ Bm
    hdn = jnp.maximum(z @ params["W1"] + params["b1"], 0.0)
    xhat = hdn @ params["W2"] + params["b2"]
    rec = 0.5 * jnp.sum((x - xhat) ** 2) / float(n)
    l1 = L1_PEN * jnp.sum(jnp.abs(Bm))
    A = jnp.eye(d, dtype=B.dtype) + Bm * Bm / float(d)
    h = jnp.trace(_matrix_power(A, d)) - float(d)
    return rec + l1 + ALPHA * h + 0.5 * RHO * h * h


# ------------- Pallas primal + JAX-twin backward via custom_vjp --------------
@jax.custom_vjp
def cae_loss(params, x):
    loss, _h = cae_forward_pallas(params, x)
    return loss


def _cae_loss_fwd(params, x):
    loss, _h = cae_forward_pallas(params, x)
    return loss, (params, x)


def _cae_loss_bwd(res, g):
    # TODO(synk): no Pallas backward pass; reverse-mode uses the pure-JAX twin
    # (one twin forward recompute here -- the only remaining duplication).
    params, x = res
    _, vjp = jax.vjp(cae_loss_jax, params, x)
    dparams, dx = vjp(g)
    return dparams, dx


cae_loss.defvjp(_cae_loss_fwd, _cae_loss_bwd)


# ----------------------------- Adam (torch defaults) -------------------------
def adam_init(params):
    return {"m": jax.tree_util.tree_map(jnp.zeros_like, params),
            "v": jax.tree_util.tree_map(jnp.zeros_like, params),
            "t": jnp.zeros((), jnp.float32)}


def adam_step(params, grads, state, lr=LR, b1=0.9, b2=0.999, eps=1e-8):
    t = state["t"] + 1.0
    m = jax.tree_util.tree_map(lambda m_, g: b1 * m_ + (1 - b1) * g,
                               state["m"], grads)
    v = jax.tree_util.tree_map(lambda v_, g: b2 * v_ + (1 - b2) * g * g,
                               state["v"], grads)
    mhat = jax.tree_util.tree_map(lambda m_: m_ / (1 - b1 ** t), m)
    vhat = jax.tree_util.tree_map(lambda v_: v_ / (1 - b2 ** t), v)
    new_params = jax.tree_util.tree_map(
        lambda p, mh, vh: p - lr * mh / (jnp.sqrt(vh) + eps),
        params, mhat, vhat)
    return new_params, {"m": m, "v": v, "t": t}


# ----------------------------- Learner forward -------------------------------
@functools.partial(jax.jit, static_argnames="meta_step")
def learner_forward(model_1_params, data, meta_step=META_STEP):
    # update_pi: model_2 <- copy of model_1 (functional copy)
    model_2 = model_1_params
    opt = adam_init(model_2)

    # Inner Adam loop: grad-only, so it skips the Pallas path entirely (the
    # Pallas primal value would be discarded by jax.grad anyway).  One pure-JAX
    # forward+backward per step, no duplicated forward, no dead kernel launch.
    def body(_, carry):
        params, opt_state = carry
        g = jax.grad(cae_loss_jax)(params, data)
        return adam_step(params, g, opt_state)

    model_2, opt = lax.fori_loop(0, meta_step, body, (model_2, opt))

    # Final step: test_loss value comes from the Pallas kernel (custom_vjp
    # primal), grads_pi from the twin's VJP -- one Pallas launch per call.
    test_loss, grads_pi = jax.value_and_grad(cae_loss)(model_2, data)
    return test_loss, grads_pi


# ----------------------------- init & main -----------------------------------
def init_cae_params(key, d, hidden=HIDDEN):
    k_b, k_w1, k_w2 = jax.random.split(key, 3)
    return {
        "B": 0.1 * jax.random.normal(k_b, (d, d), jnp.float32),
        "W1": 0.1 * jax.random.normal(k_w1, (d, hidden), jnp.float32),
        "b1": jnp.zeros((1, hidden), jnp.float32),
        "W2": 0.1 * jax.random.normal(k_w2, (hidden, d), jnp.float32),
        "b2": jnp.zeros((1, d), jnp.float32),
    }


if __name__ == "__main__":
    n, d = 2048, 8  # n samples, d variables -> X^T (8, 2048), single grid step
    key = jax.random.PRNGKey(0)
    k_data, k_params = jax.random.split(key)
    data = jax.random.normal(k_data, (n, d), jnp.float32)
    model_1_params = init_cae_params(k_params, d)

    test_loss, grads_pi = learner_forward(model_1_params, data)
    jax.block_until_ready((test_loss, grads_pi))

    # sanity 1: Pallas forward matches the pure-JAX twin
    pal = cae_loss(model_1_params, data)
    ref = cae_loss_jax(model_1_params, data)
    assert jnp.allclose(pal, ref, atol=1e-3, rtol=1e-3), (pal, ref)

    # sanity 2: grads through the custom_vjp match grads of the twin
    g_pal = jax.grad(cae_loss)(model_1_params, data)
    g_ref = jax.grad(cae_loss_jax)(model_1_params, data)
    ok = jax.tree_util.tree_all(jax.tree_util.tree_map(
        lambda a, b: jnp.allclose(a, b, atol=1e-4, rtol=1e-4), g_pal, g_ref))
    assert bool(ok), "grad mismatch between custom_vjp and pure-JAX twin"

    print("KERNEL_OK")
</pallas_src>

<mosaic_0001>
module attributes {stable_mosaic.version = 11 : i64} {
  func.func @_cae_loss_kernel(%arg0: i32, %arg1: memref<8x2048xf32, #tpu.memory_space<vmem>>, %arg2: memref<40x128xf32, #tpu.memory_space<vmem>>, %arg3: memref<1x128xf32, #tpu.memory_space<vmem>>, %arg4: memref<8x128xf32, #tpu.memory_space<vmem>>) attributes {dimension_semantics = [#tpu.dimension_semantics<arbitrary>], iteration_bounds = array<i64: 1>, scalar_prefetch = 0 : i64, scratch_operands = 1 : i64, tpu.core_type = #tpu.core_type<tc>, window_params = [{transform_indices = @transform_0, window_bounds = array<i64: 8, 2048>}, {pipeline_mode = #tpu.pipeline_mode<synchronous>, transform_indices = @transform_1, window_bounds = array<i64: 40, 128>}, {pipeline_mode = #tpu.pipeline_mode<synchronous>, transform_indices = @transform_2, window_bounds = array<i64: 1, 128>}]} {
    %c0 = arith.constant 0 : index
    %c0_0 = arith.constant 0 : index
    %0 = vector.load %arg2[%c0, %c0_0] : memref<40x128xf32, #tpu.memory_space<vmem>>, vector<8x8xf32>
    %c8 = arith.constant 8 : index
    %c0_1 = arith.constant 0 : index
    %1 = vector.load %arg2[%c8, %c0_1] : memref<40x128xf32, #tpu.memory_space<vmem>>, vector<20x8xf32>
    %c8_2 = arith.constant 8 : index
    %c8_3 = arith.constant 8 : index
    %2 = vector.load %arg2[%c8_2, %c8_3] : memref<40x128xf32, #tpu.memory_space<vmem>>, vector<20x1xf32>
    %c32 = arith.constant 32 : index
    %c0_4 = arith.constant 0 : index
    %3 = vector.load %arg2[%c32, %c0_4] : memref<40x128xf32, #tpu.memory_space<vmem>>, vector<8x20xf32>
    %c32_5 = arith.constant 32 : index
    %c20 = arith.constant 20 : index
    %4 = vector.load %arg2[%c32_5, %c20] : memref<40x128xf32, #tpu.memory_space<vmem>>, vector<8x1xf32>
    %c0_6 = arith.constant 0 : index
    %c0_7 = arith.constant 0 : index
    %5 = vector.load %arg1[%c0_6, %c0_7] : memref<8x2048xf32, #tpu.memory_space<vmem>>, vector<8x2048xf32>
    %cst = arith.constant dense<0.000000e+00> : vector<8x2048xf32>
    %6 = tpu.matmul %0, %5, %cst {dimension_numbers = #tpu.dot_dimension_numbers<[1], [0], [0], [1], [0, 0, 1, 1], [], []>} : vector<8x8xf32>, vector<8x2048xf32>, vector<8x2048xf32> -> vector<8x2048xf32>
    %cst_8 = arith.constant dense<0.000000e+00> : vector<20x2048xf32>
    %7 = tpu.matmul %1, %6, %cst_8 {dimension_numbers = #tpu.dot_dimension_numbers<[1], [0], [0], [1], [0, 0, 1, 1], [], []>} : vector<20x8xf32>, vector<8x2048xf32>, vector<20x2048xf32> -> vector<20x2048xf32>
    %8 = vector.broadcast %2 : vector<20x1xf32> to vector<20x2048xf32>
    %9 = arith.addf %7, %8 : vector<20x2048xf32>
    %cst_9 = arith.constant 0.000000e+00 : f32
    %10 = vector.broadcast %cst_9 : f32 to vector<20x2048xf32>
    %11 = arith.maximumf %9, %10 : vector<20x2048xf32>
    %cst_10 = arith.constant dense<0.000000e+00> : vector<8x2048xf32>
    %12 = tpu.matmul %3, %11, %cst_10 {dimension_numbers = #tpu.dot_dimension_numbers<[1], [0], [0], [1], [0, 0, 1, 1], [], []>} : vector<8x20xf32>, vector<20x2048xf32>, vector<8x2048xf32> -> vector<8x2048xf32>
    %13 = vector.broadcast %4 : vector<8x1xf32> to vector<8x2048xf32>
    %14 = arith.addf %12, %13 : vector<8x2048xf32>
    %15 = arith.subf %5, %14 : vector<8x2048xf32>
    %16 = arith.mulf %15, %15 : vector<8x2048xf32>
    %c0_i32 = arith.constant 0 : i32
    %17 = arith.cmpi eq, %arg0, %c0_i32 : i32
    %18 = arith.extui %17 : i1 to i32
    %c0_i32_11 = arith.constant 0 : i32
    %19 = arith.cmpi ne, %18, %c0_i32_11 : i32
    scf.if %19 {
      %cst_18 = arith.constant 0.000000e+00 : f32
      %57 = vector.broadcast %cst_18 : f32 to vector<8x128xf32>
      %c0_19 = arith.constant 0 : index
      %c0_20 = arith.constant 0 : index
      %58 = vector.load %arg4[%c0_19, %c0_20] : memref<8x128xf32, #tpu.memory_space<vmem>>, vector<8x128xf32>
      tpu.vector_store %arg4[%c0_19, %c0_20], %57 {strides = array<i32>} : memref<8x128xf32, #tpu.memory_space<vmem>>, vector<8x128xf32>,
    } else {
    }
    %20 = vector.extract_strided_slice %16 {offsets = [0, 0], sizes = [8, 128], strides = [1, 1]} : vector<8x2048xf32> to vector<8x128xf32>
    %21 = vector.extract_strided_slice %16 {offsets = [0, 128], sizes = [8, 128], strides = [1, 1]} : vector<8x2048xf32> to vector<8x128xf32>
    %22 = arith.addf %20, %21 : vector<8x128xf32>
    %23 = vector.extract_strided_slice %16 {offsets = [0, 256], sizes = [8, 128], strides = [1, 1]} : vector<8x2048xf32> to vector<8x128xf32>
    %24 = arith.addf %22, %23 : vector<8x128xf32>
    %25 = vector.extract_strided_slice %16 {offsets = [0, 384], sizes = [8, 128], strides = [1, 1]} : vector<8x2048xf32> to vector<8x128xf32>
    %26 = arith.addf %24, %25 : vector<8x128xf32>
    %27 = vector.extract_strided_slice %16 {offsets = [0, 512], sizes = [8, 128], strides = [1, 1]} : vector<8x2048xf32> to vector<8x128xf32>
    %28 = arith.addf %26, %27 : vector<8x128xf32>
    %29 = vector.extract_strided_slice %16 {offsets = [0, 640], sizes = [8, 128], strides = [1, 1]} : vector<8x2048xf32> to vector<8x128xf32>
    %30 = arith.addf %28, %29 : vector<8x128xf32>
    %31 = vector.extract_strided_slice %16 {offsets = [0, 768], sizes = [8, 128], strides = [1, 1]} : vector<8x2048xf32> to vector<8x128xf32>
    %32 = arith.addf %30, %31 : vector<8x128xf32>
    %33 = vector.extract_strided_slice %16 {offsets = [0, 896], sizes = [8, 128], strides = [1, 1]} : vector<8x2048xf32> to vector<8x128xf32>
    %34 = arith.addf %32, %33 : vector<8x128xf32>
    %35 = vector.extract_strided_slice %16 {offsets = [0, 1024], sizes = [8, 128], strides = [1, 1]} : vector<8x2048xf32> to vector<8x128xf32>
    %36 = arith.addf %34, %35 : vector<8x128xf32>
    %37 = vector.extract_strided_slice %16 {offsets = [0, 1152], sizes = [8, 128], strides = [1, 1]} : vector<8x2048xf32> to vector<8x128xf32>
    %38 = arith.addf %36, %37 : vector<8x128xf32>
    %39 = vector.extract_strided_slice %16 {offsets = [0, 1280], sizes = [8, 128], strides = [1, 1]} : vector<8x2048xf32> to vector<8x128xf32>
    %40 = arith.addf %38, %39 : vector<8x128xf32>
    %41 = vector.extract_strided_slice %16 {offsets = [0, 1408], sizes = [8, 128], strides = [1, 1]} : vector<8x2048xf32> to vector<8x128xf32>
    %42 = arith.addf %40, %41 : vector<8x128xf32>
    %43 = vector.extract_strided_slice %16 {offsets = [0, 1536], sizes = [8, 128], strides = [1, 1]} : vector<8x2048xf32> to vector<8x128xf32>
    %44 = arith.addf %42, %43 : vector<8x128xf32>
    %45 = vector.extract_strided_slice %16 {offsets = [0, 1664], sizes = [8, 128], strides = [1, 1]} : vector<8x2048xf32> to vector<8x128xf32>
    %46 = arith.addf %44, %45 : vector<8x128xf32>
    %47 = vector.extract_strided_slice %16 {offsets = [0, 1792], sizes = [8, 128], strides = [1, 1]} : vector<8x2048xf32> to vector<8x128xf32>
    %48 = arith.addf %46, %47 : vector<8x128xf32>
    %49 = vector.extract_strided_slice %16 {offsets = [0, 1920], sizes = [8, 128], strides = [1, 1]} : vector<8x2048xf32> to vector<8x128xf32>
    %50 = arith.addf %48, %49 : vector<8x128xf32>
    %c0_12 = arith.constant 0 : index
    %c0_13 = arith.constant 0 : index
    %51 = vector.load %arg4[%c0_12, %c0_13] : memref<8x128xf32, #tpu.memory_space<vmem>>, vector<8x128xf32>
    %52 = arith.addf %51, %50 : vector<8x128xf32>
    %c0_14 = arith.constant 0 : index
    %c0_15 = arith.constant 0 : index
    %53 = vector.load %arg4[%c0_14, %c0_15] : memref<8x128xf32, #tpu.memory_space<vmem>>, vector<8x128xf32>
    tpu.vector_store %arg4[%c0_14, %c0_15], %52 {strides = array<i32>} : memref<8x128xf32, #tpu.memory_space<vmem>>, vector<8x128xf32>,
    %c0_i32_16 = arith.constant 0 : i32
    %54 = arith.cmpi eq, %arg0, %c0_i32_16 : i32
    %55 = arith.extui %54 : i1 to i32
    %c0_i32_17 = arith.constant 0 : i32
    %56 = arith.cmpi ne, %55, %c0_i32_17 : i32
    scf.if %56 {
      %57 = tpu.iota {dimensions = array<i32: 0>} : vector<8x8xi32>
      %58 = tpu.iota {dimensions = array<i32: 1>} : vector<8x8xi32>
      %59 = arith.cmpi eq, %57, %58 : vector<8x8xi32>
      %cst_18 = arith.constant 1.000000e+00 : f32
      %cst_19 = arith.constant 0.000000e+00 : f32
      %60 = vector.broadcast %cst_18 : f32 to vector<8x8xf32>
      %61 = vector.broadcast %cst_19 : f32 to vector<8x8xf32>
      %62 = arith.select %59, %60, %61 : vector<8x8xi1>, vector<8x8xf32>
      %63 = arith.mulf %0, %0 : vector<8x8xf32>
      %cst_20 = arith.constant 1.250000e-01 : f32
      %64 = vector.broadcast %cst_20 : f32 to vector<8x8xf32>
      %65 = arith.mulf %63, %64 : vector<8x8xf32>
      %66 = arith.addf %62, %65 : vector<8x8xf32>
      %cst_21 = arith.constant dense<0.000000e+00> : vector<8x8xf32>
      %67 = tpu.matmul %66, %66, %cst_21 {dimension_numbers = #tpu.dot_dimension_numbers<[1], [0], [0], [1], [0, 0, 1, 1], [], []>} : vector<8x8xf32>, vector<8x8xf32>, vector<8x8xf32> -> vector<8x8xf32>
      %cst_22 = arith.constant dense<0.000000e+00> : vector<8x8xf32>
      %68 = tpu.matmul %67, %67, %cst_22 {dimension_numbers = #tpu.dot_dimension_numbers<[1], [0], [0], [1], [0, 0, 1, 1], [], []>} : vector<8x8xf32>, vector<8x8xf32>, vector<8x8xf32> -> vector<8x8xf32>
      %cst_23 = arith.constant dense<0.000000e+00> : vector<8x8xf32>
      %69 = tpu.matmul %68, %68, %cst_23 {dimension_numbers = #tpu.dot_dimension_numbers<[1], [0], [0], [1], [0, 0, 1, 1], [], []>} : vector<8x8xf32>, vector<8x8xf32>, vector<8x8xf32> -> vector<8x8xf32>
      %cst_24 = arith.constant 0.000000e+00 : f32
      %70 = vector.broadcast %cst_24 : f32 to vector<8x8xf32>
      %71 = arith.select %59, %69, %70 : vector<8x8xi1>, vector<8x8xf32>
      %72 = vector.shape_cast %71 : vector<8x8xf32> to vector<1x8x8xf32>
      %cst_25 = arith.constant dense<0.000000e+00> : vector<1xf32>
      %73 = vector.multi_reduction <add>, %72, %cst_25 [1, 2] : vector<1x8x8xf32> to vector<1xf32>
      %74 = vector.shape_cast %73 : vector<1xf32> to vector<1x1x1xf32>
      %75 = vector.extract %74[0, 0, 0] : f32 from vector<1x1x1xf32>
      %cst_26 = arith.constant 8.000000e+00 : f32
      %76 = arith.subf %75, %cst_26 : f32
      %c0_27 = arith.constant 0 : index
      %c0_28 = arith.constant 0 : index
      %77 = vector.load %arg4[%c0_27, %c0_28] : memref<8x128xf32, #tpu.memory_space<vmem>>, vector<8x128xf32>
      %78 = vector.shape_cast %77 : vector<8x128xf32> to vector<1x8x128xf32>
      %cst_29 = arith.constant dense<0.000000e+00> : vector<1xf32>
      %79 = vector.multi_reduction <add>, %78, %cst_29 [1, 2] : vector<1x8x128xf32> to vector<1xf32>
      %80 = vector.shape_cast %79 : vector<1xf32> to vector<1x1x1xf32>
      %81 = vector.extract %80[0, 0, 0] : f32 from vector<1x1x1xf32>
      %cst_30 = arith.constant 5.000000e-01 : f32
      %82 = arith.mulf %cst_30, %81 : f32
      %cst_31 = arith.constant 4.8828125E-4 : f32
      %83 = arith.mulf %82, %cst_31 : f32
      %84 = math.absf %0 : vector<8x8xf32>
      %85 = vector.shape_cast %84 : vector<8x8xf32> to vector<1x8x8xf32>
      %cst_32 = arith.constant dense<0.000000e+00> : vector<1xf32>
      %86 = vector.multi_reduction <add>, %85, %cst_32 [1, 2] : vector<1x8x8xf32> to vector<1xf32>
      %87 = vector.shape_cast %86 : vector<1xf32> to vector<1x1x1xf32>
      %88 = vector.extract %87[0, 0, 0] : f32 from vector<1x1x1xf32>
      %cst_33 = arith.constant 5.000000e-02 : f32
      %89 = arith.mulf %cst_33, %88 : f32
      %90 = arith.addf %83, %89 : f32
      %cst_34 = arith.constant 2.000000e+01 : f32
      %91 = arith.mulf %cst_34, %76 : f32
      %92 = arith.addf %90, %91 : f32
      %cst_35 = arith.constant 9.99999974E-5 : f32
      %93 = arith.mulf %cst_35, %76 : f32
      %94 = arith.mulf %93, %76 : f32
      %95 = arith.addf %92, %94 : f32
      %96 = tpu.iota {dimensions = array<i32: 1>} : vector<1x128xi32>
      %c0_i32_36 = arith.constant 0 : i32
      %97 = vector.broadcast %c0_i32_36 : i32 to vector<1x128xi32>
      %98 = arith.cmpi eq, %96, %97 : vector<1x128xi32>
      %c1_i32 = arith.constant 1 : i32
      %99 = vector.broadcast %c1_i32 : i32 to vector<1x128xi32>
      %100 = arith.cmpi eq, %96, %99 : vector<1x128xi32>
      %cst_37 = arith.constant 0.000000e+00 : f32
      %101 = vector.broadcast %76 : f32 to vector<1x128xf32>
      %102 = vector.broadcast %cst_37 : f32 to vector<1x128xf32>
      %103 = arith.select %100, %101, %102 : vector<1x128xi1>, vector<1x128xf32>
      %104 = vector.broadcast %95 : f32 to vector<1x128xf32>
      %105 = arith.select %98, %104, %103 : vector<1x128xi1>, vector<1x128xf32>
      %c0_38 = arith.constant 0 : index
      %c0_39 = arith.constant 0 : index
      %106 = vector.load %arg3[%c0_38, %c0_39] : memref<1x128xf32, #tpu.memory_space<vmem>>, vector<1x128xf32>
      tpu.vector_store %arg3[%c0_38, %c0_39], %105 {strides = array<i32>} : memref<1x128xf32, #tpu.memory_space<vmem>>, vector<1x128xf32>,
    } else {
    }
    return
  }
  func.func @transform_0(%arg0: i32) -> (i32, i32) {
    %c0_i32 = arith.constant 0 : i32
    %c0_i32_0 = arith.constant 0 : i32
    return %c0_i32, %arg0 : i32, i32
  }
  func.func @transform_1(%arg0: i32) -> (i32, i32) {
    %c0_i32 = arith.constant 0 : i32
    %c0_i32_0 = arith.constant 0 : i32
    %c0_i32_1 = arith.constant 0 : i32
    return %c0_i32, %c0_i32_0 : i32, i32
  }
  func.func @transform_2(%arg0: i32) -> (i32, i32) {
    %c0_i32 = arith.constant 0 : i32
    %c0_i32_0 = arith.constant 0 : i32
    %c0_i32_1 = arith.constant 0 : i32
    return %c0_i32, %c0_i32_0 : i32, i32
  }
}

</mosaic_0001>

<bundles_post_ra>
// kernel: custom-call.6
= control target key start
LH: loop header
LB: loop body
LE: loop exit
PB: predicated region body
PF: predicated region fallthrough
CT: control target
= control target key end

     0   :  { %s6_s0 = inlined_call_operand.vmem [shape: f32[8,20], index: 0, kind: output, shape index: {}]  }

// kernel: custom-call.9
= control target key start
LH: loop header
LB: loop body
LE: loop exit
PB: predicated region body
PF: predicated region fallthrough
CT: control target
= control target key end

     0   :  { %s6_s0 = inlined_call_operand.vmem [shape: f32[1,8], index: 0, kind: output, shape index: {}]  }

// kernel: custom-call.7
= control target key start
LH: loop header
LB: loop body
LE: loop exit
PB: predicated region body
PF: predicated region fallthrough
CT: control target
= control target key end

     0   :  { %s6_s0 = inlined_call_operand.vmem [shape: f32[20,8], index: 0, kind: output, shape index: {}]  }

// kernel: custom-call.8
= control target key start
LH: loop header
LB: loop body
LE: loop exit
PB: predicated region body
PF: predicated region fallthrough
CT: control target
= control target key end

     0   :  { %s6_s0 = inlined_call_operand.vmem [shape: f32[1,20], index: 0, kind: output, shape index: {}]  }

// kernel: custom-call.5
= control target key start
LH: loop header
LB: loop body
LE: loop exit
PB: predicated region body
PF: predicated region fallthrough
CT: control target
= control target key end

     0   :  { %s6_s0 = inlined_call_operand.vmem [shape: f32[8,8], index: 0, kind: output, shape index: {}]  }

// kernel: jvp__.1
= control target key start
LH: loop header
LB: loop body
LE: loop exit
PB: predicated region body
PF: predicated region fallthrough
CT: control target
= control target key end

     0   :  { %vm33_vm0 = vcmask 64512   ;;  %s1993_s0 = inlined_call_operand.vmem [shape: f32[8,2048], index: 0, kind: input, shape index: {}]   ;;  %s1994_s1 = inlined_call_operand.vmem [shape: f32[40,128], index: 1, kind: input, shape index: {}]   ;;  %s1995_s2 = inlined_call_operand.hbm [shape: f32[1,128], index: 2, kind: output, shape index: {}]  }
   0x1   :  { %v1582_v0 = vld [vmem:[%s1993_s0] sm:$0xff]  ;;  %v1587_v1 = vld [vmem:[%s1993_s0 + $0x8] sm:$0xff]  ;;  %v1592_v2 = vld [vmem:[%s1993_s0 + $0x10] sm:$0xff] }
   0x2   :  { %52 = vmatpush.msra.mxu0 %v1582_v0  ;;  %72 = vmatpush.msra.mxu1 %v1587_v1  ;;  %v1599_v3 = vld [vmem:[%s1993_s0 + $0x18] sm:$0xff]  ;;  %v1604_v4 = vld [vmem:[%s1994_s1] sm:$0xff]  ;;  %v1616_v6 = vld [vmem:[%s1993_s0 + $0x28] sm:$0xff] }
   0x3   :  { %92 = vmatpush.msra.mxu2 %v1592_v2  ;;  %112 = vmatpush.msra.mxu3 %v1599_v3  ;;  %v1611_v5 = vld [vmem:[%s1993_s0 + $0x20] sm:$0xff]  ;;  %v1625_v7 = vld [vmem:[%s1993_s0 + $0x30] sm:$0xff]  ;;  %v1630_v8 = vld [vmem:[%s1993_s0 + $0x38] sm:$0xff] }
   0x4   :  { %1420 = vmatmul.msk.f32.vlgmr.msra.gmra.mxu0 %vm33_vm0, %v1604_v4  ;;  %1421 = vmatmul.msk.f32.vlgmr.msra.gmra.mxu1 %vm33_vm0, %v1604_v4  ;;  %v1639_v9 = vld [vmem:[%s1993_s0 + $0x40] sm:$0xff]  ;;  %v1644_v10 = vld [vmem:[%s1993_s0 + $0x48] sm:$0xff]  ;;  %v1651_v11 = vld [vmem:[%s1993_s0 + $0x50] sm:$0xff] }
   0x5   :  { %1422 = vmatmul.msk.f32.vlgmr.msra.gmra.mxu2 %vm33_vm0, %v1604_v4  ;;  %1423 = vmatmul.msk.f32.vlgmr.msra.gmra.mxu3 %vm33_vm0, %v1604_v4  ;;  %v1656_v12 = vld [vmem:[%s1993_s0 + $0x58] sm:$0xff] }
   0x6   :  { %132 = vmatpush.msrb.mxu0 %v1611_v5  ;;  %152 = vmatpush.msrb.mxu1 %v1616_v6 }
   0x7   :  { %7 = vsyncpa [#allocation4], 0  ;;  %172 = vmatpush.msrb.mxu2 %v1625_v7  ;;  %192 = vmatpush.msrb.mxu3 %v1630_v8  ;;  %v1667_v13 = vld [vmem:[%s1993_s0 + $0x60] sm:$0xff]  ;;  %v1672_v14 = vld [vmem:[%s1993_s0 + $0x68] sm:$0xff]  ;;  %v1560_v19 = vmov 8   ;;  %vm850_vm1 = vcmask 1043456  }
   0x8   :  { %212 = vmatpush.msra.mxu0 %v1639_v9  ;;  %232 = vmatpush.msra.mxu1 %v1644_v10  ;;  %v1681_v15 = vld [vmem:[%s1993_s0 + $0x70] sm:$0xff]  ;;  %v1686_v16 = vld [vmem:[%s1993_s0 + $0x78] sm:$0xff]  ;;  %v1720_v18 = vld [vmem:[%s1994_s1 + $0x8] sm:$0xff]  ;;  %vm847_vm2 = vcmask 162816   ;;  %s1563_s5 = smov [#allocation3]   ;;  %s1411_s9 = sshll.u32 %s1995_s2, 4  ;;  %s1412_s9 = int_to_ptr.hbm [resolvable:$true] %s1411_s9 }
   0x9   :  { %252 = vmatpush.msra.mxu2 %v1651_v11  ;;  %272 = vmatpush.msra.mxu3 %v1656_v12  ;;  %v1715_v17 = vld [vmem:[%s1994_s1 + $0x18] sm:$0xf]  ;;  %v1727_v20 = vld [vmem:[%s1994_s1 + $0x10] sm:$0xff]  ;;  %s1409_s6 = sshll.u32 %s1563_s5, 4  ;;  %s1410_s6 = int_to_ptr.vmem [resolvable:$true] %s1409_s6 }
   0xa   :  { %1531 = vset.pattern.permute.xlu1 %v1560_v19  ;;  %1530 = vset.pattern.permute.xlu0 %v1560_v19 }
   0xb   :  { %369 = vperm.xlu0 %1530, %v1715_v17   ;;  %359 = vperm.xlu1 %1531, %v1720_v18  }
   0xc   :  { %1424 = vmatmul.msk.f32.vlgmr.msrb.gmra.mxu0 %vm33_vm0, %v1604_v4  ;;  %1425 = vmatmul.msk.f32.vlgmr.msrb.gmra.mxu1 %vm33_vm0, %v1604_v4 }
   0xd   :  { %1426 = vmatmul.msk.f32.vlgmr.msrb.gmra.mxu2 %vm33_vm0, %v1604_v4  ;;  %1427 = vmatmul.msk.f32.vlgmr.msrb.gmra.mxu3 %vm33_vm0, %v1604_v4 }
   0xe   :  { %292 = vmatpush.msrb.mxu0 %v1667_v13  ;;  %312 = vmatpush.msrb.mxu1 %v1672_v14 }
   0xf   :  { %332 = vmatpush.msrb.mxu2 %v1681_v15  ;;  %352 = vmatpush.msrb.mxu3 %v1686_v16 }
  0x13   :  { %364 = vperm.xlu0 %1530, %v1727_v20  }
  0x14   :  { %1428 = vmatmul.msk.f32.vlgmr.msra.gmra.mxu0 %vm33_vm0, %v1604_v4  ;;  %1429 = vmatmul.msk.f32.vlgmr.msra.gmra.mxu1 %vm33_vm0, %v1604_v4 }
  0x15   :  { %1430 = vmatmul.msk.f32.vlgmr.msra.gmra.mxu2 %vm33_vm0, %v1604_v4  ;;  %1431 = vmatmul.msk.f32.vlgmr.msra.gmra.mxu3 %vm33_vm0, %v1604_v4 }
  0x1c   :  { %1432 = vmatmul.msk.f32.vlgmr.msrb.gmra.mxu0 %vm33_vm0, %v1604_v4  ;;  %1433 = vmatmul.msk.f32.vlgmr.msrb.gmra.mxu1 %vm33_vm0, %v1604_v4 }
  0x1d   :  { %1434 = vmatmul.msk.f32.vlgmr.msrb.gmra.mxu2 %vm33_vm0, %v1604_v4  ;;  %1435 = vmatmul.msk.f32.vlgmr.msrb.gmra.mxu3 %vm33_vm0, %v1604_v4 }
  0x7d   :  { %v1826_v39 = vpop.permute.xlu0 %369  ;;  %v1831_v46 = vpop.permute.xlu1 %359 }
  0x81   :  { %v54_v21 = vpop.f32.mrf.mxu0  ;;  %v74_v22 = vpop.f32.mrf.mxu1 }
  0x82   :  { %393 = vmatpush.msra.mxu0 %v54_v21  ;;  %419 = vmatpush.msra.mxu1 %v74_v22 }
  0x83   :  { %1436 = vmatmul.msk.f32.vlgmr.msra.gmra.mxu0 %vm33_vm0, %v1720_v18  ;;  %1439 = vmatmul.msk.f32.vlgmr.msra.gmra.mxu1 %vm33_vm0, %v1720_v18 }
  0x85   :  { %v1828_v44 = vpop.permute.xlu0 %364 }
  0x88   :  { %v94_v23 = vpop.f32.mrf.mxu2  ;;  %v114_v24 = vpop.f32.mrf.mxu3 }
  0x89   :  { %445 = vmatpush.msra.mxu2 %v94_v23  ;;  %471 = vmatpush.msra.mxu3 %v114_v24  ;;  %v134_v25 = vpop.f32.mrf.mxu0  ;;  %v154_v26 = vpop.f32.mrf.mxu1 }
  0x8a   :  { %1442 = vmatmul.msk.f32.vlgmr.msra.gmra.mxu2 %vm33_vm0, %v1720_v18  ;;  %1445 = vmatmul.msk.f32.vlgmr.msra.gmra.mxu3 %vm33_vm0, %v1720_v18 }
  0x8b   :  { %497 = vmatpush.msrb.mxu0 %v134_v25  ;;  %1440 = vmatmul.msk.f32.gmra.mxu1 %vm33_vm0, %v1727_v20 }
  0x8c   :  { %1437 = vmatmul.msk.f32.gmra.mxu0 %vm33_vm0, %v1727_v20  ;;  %523 = vmatpush.msrb.mxu1 %v154_v26 }
  0x90   :  { %v174_v27 = vpop.f32.mrf.mxu2  ;;  %v194_v28 = vpop.f32.mrf.mxu3 }
  0x91   :  { %549 = vmatpush.msrb.mxu2 %v174_v27  ;;  %575 = vmatpush.msrb.mxu3 %v194_v28  ;;  %v214_v29 = vpop.f32.mrf.mxu0  ;;  %v234_v30 = vpop.f32.mrf.mxu1 }
  0x92   :  { %1443 = vmatmul.msk.f32.gmra.mxu2 %vm33_vm0, %v1727_v20  ;;  %1446 = vmatmul.msk.f32.gmra.mxu3 %vm33_vm0, %v1727_v20 }
  0x93   :  { %1441 = vmatmul.msk.f32.gmra.mxu1 %vm33_vm0, %v1715_v17  ;;  %601 = vmatpush.msra.mxu0 %v214_v29 }
  0x94   :  { %1438 = vmatmul.msk.f32.gmra.mxu0 %vm33_vm0, %v1715_v17  ;;  %627 = vmatpush.msra.mxu1 %v234_v30 }
  0x98   :  { %v254_v31 = vpop.f32.mrf.mxu2  ;;  %v274_v32 = vpop.f32.mrf.mxu3 }
  0x99   :  { %653 = vmatpush.msra.mxu2 %v254_v31  ;;  %679 = vmatpush.msra.mxu3 %v274_v32  ;;  %v294_v33 = vpop.f32.mrf.mxu0  ;;  %v314_v34 = vpop.f32.mrf.mxu1 }
  0x9a   :  { %1444 = vmatmul.msk.f32.gmra.mxu2 %vm33_vm0, %v1715_v17  ;;  %1447 = vmatmul.msk.f32.gmra.mxu3 %vm33_vm0, %v1715_v17 }
  0x9b   :  { %1451 = vmatmul.msk.f32.vlgmr.msrb.gmra.mxu1 %vm33_vm0, %v1720_v18 }
  0x9c   :  { %1448 = vmatmul.msk.f32.vlgmr.msrb.gmra.mxu0 %vm33_vm0, %v1720_v18  ;;  %731 = vmatpush.msrb.mxu1 %v314_v34 }
  0x9d   :  { %705 = vmatpush.msrb.mxu0 %v294_v33 }
  0xa0   :  { %v334_v35 = vpop.f32.mrf.mxu2  ;;  %v354_v36 = vpop.f32.mrf.mxu3 }
  0xa2   :  { %1454 = vmatmul.msk.f32.vlgmr.msrb.gmra.mxu2 %vm33_vm0, %v1720_v18  ;;  %1457 = vmatmul.msk.f32.vlgmr.msrb.gmra.mxu3 %vm33_vm0, %v1720_v18 }
  0xa3   :  { %1452 = vmatmul.msk.f32.gmra.mxu1 %vm33_vm0, %v1727_v20  ;;  %757 = vmatpush.msrb.mxu2 %v334_v35  ;;  %v1851_v35 = vld [vmem:[%s1994_s1 + $0x20] sm:$0xff] }
  0xa4   :  { %1449 = vmatmul.msk.f32.gmra.mxu0 %vm33_vm0, %v1727_v20  ;;  %783 = vmatpush.msrb.mxu3 %v354_v36 }
  0xaa   :  { %1455 = vmatmul.msk.f32.gmra.mxu2 %vm33_vm0, %v1727_v20  ;;  %1458 = vmatmul.msk.f32.gmra.mxu3 %vm33_vm0, %v1727_v20 }
  0xab   :  { %1453 = vmatmul.msk.f32.gmra.mxu1 %vm33_vm0, %v1715_v17 }
  0xac   :  { %1450 = vmatmul.msk.f32.gmra.mxu0 %vm33_vm0, %v1715_v17 }
  0xb2   :  { %1456 = vmatmul.msk.f32.gmra.mxu2 %vm33_vm0, %v1715_v17  ;;  %1459 = vmatmul.msk.f32.gmra.mxu3 %vm33_vm0, %v1715_v17 }
  0xb3   :  { %1463 = vmatmul.msk.f32.vlgmr.msra.gmra.mxu1 %vm33_vm0, %v1720_v18 }
  0xb4   :  { %1460 = vmatmul.msk.f32.vlgmr.msra.gmra.mxu0 %vm33_vm0, %v1720_v18 }
  0xba   :  { %1466 = vmatmul.msk.f32.vlgmr.msra.gmra.mxu2 %vm33_vm0, %v1720_v18  ;;  %1469 = vmatmul.msk.f32.vlgmr.msra.gmra.mxu3 %vm33_vm0, %v1720_v18 }
  0xbb   :  { %1464 = vmatmul.msk.f32.gmra.mxu1 %vm33_vm0, %v1727_v20 }
  0xbc   :  { %1461 = vmatmul.msk.f32.gmra.mxu0 %vm33_vm0, %v1727_v20 }
  0xc2   :  { %1467 = vmatmul.msk.f32.gmra.mxu2 %vm33_vm0, %v1727_v20  ;;  %1470 = vmatmul.msk.f32.gmra.mxu3 %vm33_vm0, %v1727_v20 }
  0xc3   :  { %1465 = vmatmul.msk.f32.gmra.mxu1 %vm33_vm0, %v1715_v17 }
  0xc4   :  { %1462 = vmatmul.msk.f32.gmra.mxu0 %vm33_vm0, %v1715_v17 }
  0xca   :  { %1468 = vmatmul.msk.f32.gmra.mxu2 %vm33_vm0, %v1715_v17  ;;  %1471 = vmatmul.msk.f32.gmra.mxu3 %vm33_vm0, %v1715_v17 }
  0xcb   :  { %1475 = vmatmul.msk.f32.vlgmr.msrb.gmra.mxu1 %vm33_vm0, %v1720_v18 }
  0xcc   :  { %1472 = vmatmul.msk.f32.vlgmr.msrb.gmra.mxu0 %vm33_vm0, %v1720_v18 }
  0xd2   :  { %1478 = vmatmul.msk.f32.vlgmr.msrb.gmra.mxu2 %vm33_vm0, %v1720_v18  ;;  %1481 = vmatmul.msk.f32.vlgmr.msrb.gmra.mxu3 %vm33_vm0, %v1720_v18 }
  0xd3   :  { %1476 = vmatmul.msk.f32.gmra.mxu1 %vm33_vm0, %v1727_v20 }
  0xd4   :  { %1473 = vmatmul.msk.f32.gmra.mxu0 %vm33_vm0, %v1727_v20 }
  0xda   :  { %1479 = vmatmul.msk.f32.gmra.mxu2 %vm33_vm0, %v1727_v20  ;;  %1482 = vmatmul.msk.f32.gmra.mxu3 %vm33_vm0, %v1727_v20 }
  0xdb   :  { %1477 = vmatmul.msk.f32.gmra.mxu1 %vm33_vm0, %v1715_v17 }
  0xdc   :  { %1474 = vmatmul.msk.f32.gmra.mxu0 %vm33_vm0, %v1715_v17 }
  0xe2   :  { %1480 = vmatmul.msk.f32.gmra.mxu2 %vm33_vm0, %v1715_v17  ;;  %1483 = vmatmul.msk.f32.gmra.mxu3 %vm33_vm0, %v1715_v17 }
 0x100   :  { %v395_v37 = vpop.f32.mrf.mxu0  ;;  %v421_v38 = vpop.f32.mrf.mxu1 }
 0x101   :  { %v422_v48 = vadd.f32 %v421_v38, %v1831_v46  ;;  %v396_v55 = vadd.f32 %v395_v37, %v1831_v46 }
 0x103   :  { %v795_v57 = vmax.f32 %v422_v48, 0.0  ;;  %v794_v61 = vmax.f32 %v396_v55, 0.0 }
 0x108   :  { %v424_v40 = vpop.f32.mrf.mxu1 }
 0x109   :  { %v398_v41 = vpop.f32.mrf.mxu0  ;;  %v425_v45 = vadd.f32 %v424_v40, %v1828_v44 }
 0x10a   :  { %v399_v51 = vadd.f32 %v398_v41, %v1828_v44 }
 0x10b   :  { %v811_v53 = vmax.f32 %v425_v45, 0.0 }
 0x10c   :  { %v810_v60 = vmax.f32 %v399_v51, 0.0 }
 0x10d   :  { %v447_v42 = vpop.f32.mrf.mxu2  ;;  %v473_v43 = vpop.f32.mrf.mxu3 }
 0x10e   :  { %v448_v21 = vadd.f32 %v447_v42, %v1831_v46  ;;  %v474_v22 = vadd.f32 %v473_v43, %v1831_v46 }
 0x110   :  { %v427_v47 = vpop.f32.mrf.mxu1  ;;  %v796_v31 = vmax.f32 %v448_v21, 0.0  ;;  %v797_v32 = vmax.f32 %v474_v22, 0.0 }
 0x111   :  { %v401_v49 = vpop.f32.mrf.mxu0  ;;  %v428_v50 = vadd.f32 %v427_v47, %v1826_v39 }
 0x112   :  { %v402_v52 = vadd.f32 %v401_v49, %v1826_v39 }
 0x113   :  { %v827_v54 = vmax.f32 %v428_v50, 0.0 }
 0x114   :  { %v826_v56 = vmax.f32 %v402_v52, 0.0 }
 0x115   :  { %v450_v58 = vpop.f32.mrf.mxu2  ;;  %v476_v59 = vpop.f32.mrf.mxu3  ;;  %1486 = vmatpush.msk.msra.mxu1 %vm850_vm1, %v827_v54 }
 0x116   :  { %1484 = vmatpush.msk.msra.mxu0 %vm850_vm1, %v826_v56  ;;  %v451_v17 = vadd.f32 %v450_v58, %v1828_v44  ;;  %v477_v18 = vadd.f32 %v476_v59, %v1828_v44 }
 0x117   :  { %933 = vmatpush.msra.mxu1 %v811_v53 }
 0x118   :  { %913 = vmatpush.msra.mxu0 %v810_v60  ;;  %v525_v62 = vpop.f32.mrf.mxu1  ;;  %v812_v25 = vmax.f32 %v451_v17, 0.0  ;;  %v813_v26 = vmax.f32 %v477_v18, 0.0 }
 0x119   :  { %v499_v63 = vpop.f32.mrf.mxu0  ;;  %934 = vmatpush.msra.mxu1 %v795_v57  ;;  %v526_v38 = vadd.f32 %v525_v62, %v1831_v46 }
 0x11a   :  { %914 = vmatpush.msra.mxu0 %v794_v61  ;;  %1487 = vmatmul.msk.f32.vlgmr.msra.gmra.mxu1 %vm847_vm2, %v1851_v35  ;;  %v500_v48 = vadd.f32 %v499_v63, %v1831_v46  ;;  %v1561_v61 = vmov 20  }
 0x11b   :  { %1485 = vmatmul.msk.f32.vlgmr.msra.gmra.mxu0 %vm847_vm2, %v1851_v35  ;;  %v799_v50 = vmax.f32 %v526_v38, 0.0  ;;  %1532 = vset.pattern.permute.xlu1 %v1561_v61 }
 0x11c   :  { %v798_v54 = vmax.f32 %v500_v48, 0.0  ;;  %1533 = vset.pattern.permute.xlu0 %v1561_v61  ;;  %844 = vperm.xlu1 %1532, %v1851_v35  }
 0x11d   :  { %v453_v19 = vpop.f32.mrf.mxu2  ;;  %v479_v20 = vpop.f32.mrf.mxu3 }
 0x11e   :  { %v454_v23 = vadd.f32 %v453_v19, %v1826_v39  ;;  %v480_v24 = vadd.f32 %v479_v20, %v1826_v39 }
 0x120   :  { %v828_v27 = vmax.f32 %v454_v23, 0.0  ;;  %v829_v28 = vmax.f32 %v480_v24, 0.0  ;;  %v528_v29 = vpop.f32.mrf.mxu1 }
 0x121   :  { %v502_v30 = vpop.f32.mrf.mxu0  ;;  %v529_v36 = vadd.f32 %v528_v29, %v1828_v44 }
 0x122   :  { %1488 = vmatpush.msk.msra.mxu2 %vm850_vm1, %v828_v27  ;;  %1490 = vmatpush.msk.msra.mxu3 %vm850_vm1, %v829_v28  ;;  %v503_v42 = vadd.f32 %v502_v30, %v1828_v44 }
 0x123   :  { %v815_v45 = vmax.f32 %v529_v36, 0.0 }
 0x124   :  { %953 = vmatpush.msra.mxu2 %v812_v25  ;;  %973 = vmatpush.msra.mxu3 %v813_v26  ;;  %v814_v53 = vmax.f32 %v503_v42, 0.0 }
 0x125   :  { %v551_v33 = vpop.f32.mrf.mxu2  ;;  %v577_v34 = vpop.f32.mrf.mxu3 }
 0x126   :  { %954 = vmatpush.msra.mxu2 %v796_v31  ;;  %974 = vmatpush.msra.mxu3 %v797_v32  ;;  %v552_v62 = vadd.f32 %v551_v33, %v1831_v46  ;;  %v578_v63 = vadd.f32 %v577_v34, %v1831_v46 }
 0x127   :  { %1489 = vmatmul.msk.f32.vlgmr.msra.gmra.mxu2 %vm847_vm2, %v1851_v35  ;;  %1491 = vmatmul.msk.f32.vlgmr.msra.gmra.mxu3 %vm847_vm2, %v1851_v35 }
 0x128   :  { %v531_v37 = vpop.f32.mrf.mxu1  ;;  %v800_v25 = vmax.f32 %v552_v62, 0.0  ;;  %v801_v26 = vmax.f32 %v578_v63, 0.0 }
 0x129   :  { %v505_v40 = vpop.f32.mrf.mxu0  ;;  %v532_v41 = vadd.f32 %v531_v37, %v1826_v39 }
 0x12a   :  { %v506_v43 = vadd.f32 %v505_v40, %v1826_v39 }
 0x12b   :  { %v831_v47 = vmax.f32 %v532_v41, 0.0 }
 0x12c   :  { %v830_v49 = vmax.f32 %v506_v43, 0.0 }
 0x12d   :  { %v554_v51 = vpop.f32.mrf.mxu2  ;;  %v580_v52 = vpop.f32.mrf.mxu3  ;;  %1494 = vmatpush.msk.msrb.mxu1 %vm850_vm1, %v831_v47 }
 0x12e   :  { %1492 = vmatpush.msk.msrb.mxu0 %vm850_vm1, %v830_v49  ;;  %v555_v57 = vadd.f32 %v554_v51, %v1828_v44  ;;  %v581_v58 = vadd.f32 %v580_v52, %v1828_v44 }
 0x12f   :  { %1013 = vmatpush.msrb.mxu1 %v815_v45 }
 0x130   :  { %993 = vmatpush.msrb.mxu0 %v814_v53  ;;  %v629_v55 = vpop.f32.mrf.mxu1  ;;  %v816_v19 = vmax.f32 %v555_v57, 0.0  ;;  %v817_v20 = vmax.f32 %v581_v58, 0.0 }
 0x131   :  { %v603_v56 = vpop.f32.mrf.mxu0  ;;  %1014 = vmatpush.msrb.mxu1 %v799_v50  ;;  %v630_v30 = vadd.f32 %v629_v55, %v1831_v46 }
 0x132   :  { %994 = vmatpush.msrb.mxu0 %v798_v54  ;;  %1495 = vmatmul.msk.f32.vlgmr.msrb.gmra.mxu1 %vm847_vm2, %v1851_v35  ;;  %v604_v38 = vadd.f32 %v603_v56, %v1831_v46 }
 0x133   :  { %1493 = vmatmul.msk.f32.vlgmr.msrb.gmra.mxu0 %vm847_vm2, %v1851_v35  ;;  %v803_v41 = vmax.f32 %v630_v30, 0.0 }
 0x134   :  { %v802_v48 = vmax.f32 %v604_v38, 0.0 }
 0x135   :  { %v557_v59 = vpop.f32.mrf.mxu2  ;;  %v583_v60 = vpop.f32.mrf.mxu3 }
 0x136   :  { %v558_v17 = vadd.f32 %v557_v59, %v1826_v39  ;;  %v584_v18 = vadd.f32 %v583_v60, %v1826_v39 }
 0x138   :  { %v832_v21 = vmax.f32 %v558_v17, 0.0  ;;  %v833_v22 = vmax.f32 %v584_v18, 0.0  ;;  %v632_v23 = vpop.f32.mrf.mxu1  ;;  %v1277_v18 = vlaneseq }
 0x139   :  { %v606_v24 = vpop.f32.mrf.mxu0  ;;  %v633_v31 = vadd.f32 %v632_v23, %v1828_v44 }
 0x13a   :  { %1496 = vmatpush.msk.msrb.mxu2 %vm850_vm1, %v832_v21  ;;  %1498 = vmatpush.msk.msrb.mxu3 %vm850_vm1, %v833_v22  ;;  %v607_v34 = vadd.f32 %v606_v24, %v1828_v44  ;;  %v1906_v23 = vshrl.u32 %v1277_v18, 7  ;;  %v1908_v24 = vand.u32 127, %v1277_v18 }
 0x13b   :  { %v819_v42 = vmax.f32 %v633_v31, 0.0 }
 0x13c   :  { %1033 = vmatpush.msrb.mxu2 %v816_v19  ;;  %1053 = vmatpush.msrb.mxu3 %v817_v20  ;;  %v818_v47 = vmax.f32 %v607_v34, 0.0  ;;  %vm1281_vm3 = vcmp.eq.s32.totalorder %v1906_v23, %v1908_v24  ;;  %vm1398_vm4 = vcmp.eq.s32.totalorder %v1908_v24, 1  ;;  %vm1397_vm5 = vcmp.eq.s32.totalorder %v1908_v24, 0 }
 0x13d   :  { %v655_v27 = vpop.f32.mrf.mxu2  ;;  %v681_v28 = vpop.f32.mrf.mxu3 }
 0x13e   :  { %1034 = vmatpush.msrb.mxu2 %v800_v25  ;;  %1054 = vmatpush.msrb.mxu3 %v801_v26  ;;  %v656_v57 = vadd.f32 %v655_v27, %v1831_v46  ;;  %v682_v58 = vadd.f32 %v681_v28, %v1831_v46  ;;  %v1283_v26 = vmul.f32 %v1604_v4, %v1604_v4 }
 0x13f   :  { %1497 = vmatmul.msk.f32.vlgmr.msrb.gmra.mxu2 %vm847_vm2, %v1851_v35  ;;  %1499 = vmatmul.msk.f32.vlgmr.msrb.gmra.mxu3 %vm847_vm2, %v1851_v35 }
 0x140   :  { %v635_v29 = vpop.f32.mrf.mxu1  ;;  %v804_v19 = vmax.f32 %v656_v57, 0.0  ;;  %v805_v20 = vmax.f32 %v682_v58, 0.0 }
 0x141   :  { %v609_v32 = vpop.f32.mrf.mxu0  ;;  %v636_v33 = vadd.f32 %v635_v29, %v1826_v39 }
 0x142   :  { %v610_v36 = vadd.f32 %v609_v32, %v1826_v39 }
 0x143   :  { %v835_v37 = vmax.f32 %v636_v33, 0.0 }
 0x144   :  { %v834_v40 = vmax.f32 %v610_v36, 0.0 }
 0x145   :  { %v658_v43 = vpop.f32.mrf.mxu2  ;;  %v684_v45 = vpop.f32.mrf.mxu3  ;;  %1502 = vmatpush.msk.msra.mxu1 %vm850_vm1, %v835_v37  ;;  %v1284_v37 = vmul.f32 0.125, %v1283_v26 }
 0x146   :  { %1500 = vmatpush.msk.msra.mxu0 %vm850_vm1, %v834_v40  ;;  %v659_v53 = vadd.f32 %v658_v43, %v1828_v44  ;;  %v685_v54 = vadd.f32 %v684_v45, %v1828_v44 }
 0x147   :  { %1093 = vmatpush.msra.mxu1 %v819_v42  ;;  %v1562_v42 = vmov 0.0  }
 0x148   :  { %1073 = vmatpush.msra.mxu0 %v818_v47  ;;  %v733_v49 = vpop.f32.mrf.mxu1  ;;  %v820_v63 = vmax.f32 %v659_v53, 0.0  ;;  %v821_v17 = vmax.f32 %v685_v54, 0.0  ;;  %v1282_v43 = vsel %vm1281_vm3, 1.0, %v1562_v42 }
 0x149   :  { %v707_v50 = vpop.f32.mrf.mxu0  ;;  %1094 = vmatpush.msra.mxu1 %v803_v41  ;;  %v734_v32 = vadd.f32 %v733_v49, %v1831_v46  ;;  %v1285_v49 = vadd.f32 %v1284_v37, %v1282_v43 }
 0x14a   :  { %1074 = vmatpush.msra.mxu0 %v802_v48  ;;  %1503 = vmatmul.msk.f32.vlgmr.msra.gmra.mxu1 %vm847_vm2, %v1851_v35  ;;  %v708_v34 = vadd.f32 %v707_v50, %v1831_v46 }
 0x14b   :  { %1501 = vmatmul.msk.f32.vlgmr.msra.gmra.mxu0 %vm847_vm2, %v1851_v35  ;;  %v807_v47 = vmax.f32 %v734_v32, 0.0 }
 0x14c   :  { %v806_v48 = vmax.f32 %v708_v34, 0.0 }
 0x14d   :  { %v661_v51 = vpop.f32.mrf.mxu2  ;;  %v687_v52 = vpop.f32.mrf.mxu3 }
 0x14e   :  { %v662_v55 = vadd.f32 %v661_v51, %v1826_v39  ;;  %v688_v56 = vadd.f32 %v687_v52, %v1826_v39 }
 0x150   :  { %v836_v59 = vmax.f32 %v662_v55, 0.0  ;;  %v837_v60 = vmax.f32 %v688_v56, 0.0  ;;  %v736_v61 = vpop.f32.mrf.mxu1 }
 0x151   :  { %v710_v62 = vpop.f32.mrf.mxu0  ;;  %v737_v27 = vadd.f32 %v736_v61, %v1828_v44 }
 0x152   :  { %1504 = vmatpush.msk.msra.mxu2 %vm850_vm1, %v836_v59  ;;  %1506 = vmatpush.msk.msra.mxu3 %vm850_vm1, %v837_v60  ;;  %v711_v30 = vadd.f32 %v710_v62, %v1828_v44 }
 0x153   :  { %v823_v38 = vmax.f32 %v737_v27, 0.0 }
 0x154   :  { %1113 = vmatpush.msra.mxu2 %v820_v63  ;;  %1133 = vmatpush.msra.mxu3 %v821_v17  ;;  %v822_v45 = vmax.f32 %v711_v30, 0.0 }
 0x155   :  { %v759_v21 = vpop.f32.mrf.mxu2  ;;  %v785_v22 = vpop.f32.mrf.mxu3 }
 0x156   :  { %1114 = vmatpush.msra.mxu2 %v804_v19  ;;  %1134 = vmatpush.msra.mxu3 %v805_v20  ;;  %v760_v56 = vadd.f32 %v759_v21, %v1831_v46  ;;  %v786_v57 = vadd.f32 %v785_v22, %v1831_v46 }
 0x157   :  { %1505 = vmatmul.msk.f32.vlgmr.msra.gmra.mxu2 %vm847_vm2, %v1851_v35  ;;  %1507 = vmatmul.msk.f32.vlgmr.msra.gmra.mxu3 %vm847_vm2, %v1851_v35 }
 0x158   :  { %v739_v25 = vpop.f32.mrf.mxu1  ;;  %v808_v62 = vmax.f32 %v760_v56, 0.0 }
 0x159   :  { %v713_v28 = vpop.f32.mrf.mxu0  ;;  %v740_v29 = vadd.f32 %v739_v25, %v1826_v39 }
 0x15a   :  { %v714_v31 = vadd.f32 %v713_v28, %v1826_v39 }
 0x15b   :  { %v839_v33 = vmax.f32 %v740_v29, 0.0 }
 0x15c   :  { %v838_v36 = vmax.f32 %v714_v31, 0.0 }
 0x15d   :  { %v762_v40 = vpop.f32.mrf.mxu2  ;;  %v788_v41 = vpop.f32.mrf.mxu3  ;;  %1510 = vmatpush.msk.msrb.mxu1 %vm850_vm1, %v839_v33 }
 0x15e   :  { %1508 = vmatpush.msk.msrb.mxu0 %vm850_vm1, %v838_v36  ;;  %v763_v52 = vadd.f32 %v762_v40, %v1828_v44  ;;  %v789_v53 = vadd.f32 %v788_v41, %v1828_v44  ;;  %v809_v44 = vmax.f32 %v786_v57, 0.0 }
 0x15f   :  { %1173 = vmatpush.msrb.mxu1 %v823_v38 }
 0x160   :  { %1153 = vmatpush.msrb.mxu0 %v822_v45  ;;  %v824_v60 = vmax.f32 %v763_v52, 0.0  ;;  %v825_v61 = vmax.f32 %v789_v53, 0.0 }
 0x161   :  { %1174 = vmatpush.msrb.mxu1 %v807_v47 }
 0x162   :  { %1154 = vmatpush.msrb.mxu0 %v806_v48  ;;  %1511 = vmatmul.msk.f32.vlgmr.msrb.gmra.mxu1 %vm847_vm2, %v1851_v35 }
 0x163   :  { %1509 = vmatmul.msk.f32.vlgmr.msrb.gmra.mxu0 %vm847_vm2, %v1851_v35 }
 0x164   :  { %1304 = vmatpush.msra.mxu0 %v1285_v49 }
 0x165   :  { %v765_v50 = vpop.f32.mrf.mxu2  ;;  %v791_v51 = vpop.f32.mrf.mxu3 }
 0x166   :  { %v766_v54 = vadd.f32 %v765_v50, %v1826_v39  ;;  %v792_v55 = vadd.f32 %v791_v51, %v1826_v39 }
 0x168   :  { %v840_v58 = vmax.f32 %v766_v54, 0.0  ;;  %v841_v59 = vmax.f32 %v792_v55, 0.0 }
 0x16a   :  { %1512 = vmatpush.msk.msrb.mxu2 %vm850_vm1, %v840_v58  ;;  %1514 = vmatpush.msk.msrb.mxu3 %vm850_vm1, %v841_v59 }
 0x16b   :  { %1516 = vmatmul.msk.f32.vlgmr.msra.gmra.mxu0 %vm33_vm0, %v1285_v49 }
 0x16c   :  { %1193 = vmatpush.msrb.mxu2 %v824_v60  ;;  %1213 = vmatpush.msrb.mxu3 %v825_v61 }
 0x16e   :  { %1194 = vmatpush.msrb.mxu2 %v808_v62  ;;  %1214 = vmatpush.msrb.mxu3 %v809_v44 }
 0x16f   :  { %1513 = vmatmul.msk.f32.vlgmr.msrb.gmra.mxu2 %vm847_vm2, %v1851_v35  ;;  %1515 = vmatmul.msk.f32.vlgmr.msrb.gmra.mxu3 %vm847_vm2, %v1851_v35 }
 0x18e   :  { %v1946_v63 = vpop.permute.xlu1 %844 }
 0x197   :  { %v936_v39 = vpop.f32.mrf.mxu1 }
 0x198   :  { %v916_v46 = vpop.f32.mrf.mxu0  ;;  %v937_v18 = vadd.f32 %v936_v39, %v1946_v63 }
 0x199   :  { %v917_v17 = vadd.f32 %v916_v46, %v1946_v63 }
 0x19a   :  { %v1220_v20 = vsub.f32 %v1587_v1, %v937_v18 }
 0x19b   :  { %v1219_v19 = vsub.f32 %v1582_v0, %v917_v17 }
 0x19c   :  { %v1236_v35 = vmul.f32 %v1220_v20, %v1220_v20 }
 0x19d   :  { %v1235_v27 = vmul.f32 %v1219_v19, %v1219_v19 }
 0x19f   :  { %v1256_v30 = vadd.f32 %v1236_v35, %v1235_v27 }
 0x1aa   :  { %v956_v21 = vpop.f32.mrf.mxu2  ;;  %v976_v22 = vpop.f32.mrf.mxu3 }
 0x1ab   :  { %v957_v25 = vadd.f32 %v956_v21, %v1946_v63  ;;  %v977_v26 = vadd.f32 %v976_v22, %v1946_v63 }
 0x1ad   :  { %v1221_v28 = vsub.f32 %v1592_v2, %v957_v25  ;;  %v1222_v29 = vsub.f32 %v1599_v3, %v977_v26 }
 0x1af   :  { %v1016_v31 = vpop.f32.mrf.mxu1  ;;  %v1237_v32 = vmul.f32 %v1221_v28, %v1221_v28  ;;  %v1238_v33 = vmul.f32 %v1222_v29, %v1222_v29 }
 0x1b0   :  { %v996_v34 = vpop.f32.mrf.mxu0  ;;  %v1017_v0 = vadd.f32 %v1016_v31, %v1946_v63 }
 0x1b1   :  { %v997_v1 = vadd.f32 %v996_v34, %v1946_v63  ;;  %v1257_v36 = vadd.f32 %v1256_v30, %v1237_v32 }
 0x1b2   :  { %v1224_v37 = vsub.f32 %v1616_v6, %v1017_v0 }
 0x1b3   :  { %v1223_v38 = vsub.f32 %v1611_v5, %v997_v1  ;;  %v1258_v40 = vadd.f32 %v1257_v36, %v1238_v33 }
 0x1b4   :  { %v1240_v42 = vmul.f32 %v1224_v37, %v1224_v37 }
 0x1b5   :  { %v1239_v41 = vmul.f32 %v1223_v38, %v1223_v38 }
 0x1b7   :  { %v1259_v2 = vadd.f32 %v1258_v40, %v1239_v41 }
 0x1b9   :  { %v1260_v43 = vadd.f32 %v1259_v2, %v1240_v42 }
 0x1c2   :  { %v1036_v3 = vpop.f32.mrf.mxu2  ;;  %v1056_v45 = vpop.f32.mrf.mxu3 }
 0x1c3   :  { %v1037_v47 = vadd.f32 %v1036_v3, %v1946_v63  ;;  %v1057_v48 = vadd.f32 %v1056_v45, %v1946_v63 }
 0x1c5   :  { %v1225_v49 = vsub.f32 %v1625_v7, %v1037_v47  ;;  %v1226_v50 = vsub.f32 %v1630_v8, %v1057_v48 }
 0x1c7   :  { %v1241_v51 = vmul.f32 %v1225_v49, %v1225_v49  ;;  %v1242_v52 = vmul.f32 %v1226_v50, %v1226_v50  ;;  %v1096_v6 = vpop.f32.mrf.mxu1 }
 0x1c8   :  { %v1076_v53 = vpop.f32.mrf.mxu0  ;;  %v1097_v5 = vadd.f32 %v1096_v6, %v1946_v63 }
 0x1c9   :  { %v1261_v54 = vadd.f32 %v1260_v43, %v1241_v51  ;;  %v1077_v55 = vadd.f32 %v1076_v53, %v1946_v63 }
 0x1ca   :  { %v1228_v56 = vsub.f32 %v1644_v10, %v1097_v5 }
 0x1cb   :  { %v1262_v57 = vadd.f32 %v1261_v54, %v1242_v52  ;;  %v1227_v58 = vsub.f32 %v1639_v9, %v1077_v55 }
 0x1cc   :  { %v1244_v60 = vmul.f32 %v1228_v56, %v1228_v56 }
 0x1cd   :  { %v1243_v59 = vmul.f32 %v1227_v58, %v1227_v58 }
 0x1cf   :  { %v1263_v61 = vadd.f32 %v1262_v57, %v1243_v59 }
 0x1d1   :  { %v1264_v7 = vadd.f32 %v1263_v61, %v1244_v60 }
 0x1da   :  { %v1116_v62 = vpop.f32.mrf.mxu2  ;;  %v1136_v8 = vpop.f32.mrf.mxu3 }
 0x1db   :  { %v1117_v44 = vadd.f32 %v1116_v62, %v1946_v63  ;;  %v1137_v39 = vadd.f32 %v1136_v8, %v1946_v63 }
 0x1dd   :  { %v1229_v46 = vsub.f32 %v1651_v11, %v1117_v44  ;;  %v1230_v17 = vsub.f32 %v1656_v12, %v1137_v39  ;;  %v1379_v11 = vand.u32 2147483647, %v1604_v4 }
 0x1df   :  { %v1245_v18 = vmul.f32 %v1229_v46, %v1229_v46  ;;  %v1246_v20 = vmul.f32 %v1230_v17, %v1230_v17  ;;  %v1176_v35 = vpop.f32.mrf.mxu1  ;;  %v1380_v12 = vsel %vm33_vm0, %v1379_v11, 0.0 }
 0x1e0   :  { %v1156_v19 = vpop.f32.mrf.mxu0  ;;  %1381 = vadd.xlane.f32.xlu0 %v1380_v12 }
 0x1e1   :  { %v1265_v10 = vadd.f32 %v1264_v7, %v1245_v18  ;;  %v1157_v9 = vadd.f32 %v1156_v19, %v1946_v63 }
 0x1e3   :  { %v1231_v21 = vsub.f32 %v1667_v13, %v1157_v9  ;;  %v1266_v22 = vadd.f32 %v1265_v10, %v1246_v20  ;;  %v1177_v13 = vadd.f32 %v1176_v35, %v1946_v63 }
 0x1e5   :  { %v1247_v25 = vmul.f32 %v1231_v21, %v1231_v21  ;;  %v1232_v32 = vsub.f32 %v1672_v14, %v1177_v13 }
 0x1e7   :  { %v1267_v26 = vadd.f32 %v1266_v22, %v1247_v25  ;;  %v1248_v0 = vmul.f32 %v1232_v32, %v1232_v32 }
 0x1e8   :  { %v1306_v27 = vpop.f32.mrf.mxu0 }
 0x1e9   :  { %1327 = vmatpush.msra.mxu1 %v1306_v27  ;;  %v1268_v40 = vadd.f32 %v1267_v26, %v1248_v0 }
 0x1ea   :  { %1517 = vmatmul.msk.f32.vlgmr.msra.gmra.mxu1 %vm33_vm0, %v1306_v27 }
 0x1f2   :  { %v1196_v29 = vpop.f32.mrf.mxu2  ;;  %v1216_v31 = vpop.f32.mrf.mxu3 }
 0x1f3   :  { %v1197_v30 = vadd.f32 %v1196_v29, %v1946_v63  ;;  %v1217_v34 = vadd.f32 %v1216_v31, %v1946_v63 }
 0x1f5   :  { %v1233_v33 = vsub.f32 %v1681_v15, %v1197_v30  ;;  %v1234_v4 = vsub.f32 %v1686_v16, %v1217_v34 }
 0x1f7   :  { %v1249_v36 = vmul.f32 %v1233_v33, %v1233_v33  ;;  %v1250_v41 = vmul.f32 %v1234_v4, %v1234_v4 }
 0x1f9   :  { %v1269_v42 = vadd.f32 %v1268_v40, %v1249_v36 }
 0x1fb   :  { %v1270_v14 = vadd.f32 %v1269_v42, %v1250_v41 }
 0x253   :  { %v1382_v15 = vpop.xlane.xlu0 %1381 }
 0x254   :  { %v1383_v63 = vrot.slane %v1382_v15, 4 }
 0x256   :  { %v1384_v45 = vadd.f32 %v1383_v63, %v1382_v15 }
 0x258   :  { %v1385_v49 = vrot.slane %v1384_v45, 2 }
 0x25a   :  { %v1386_v6 = vadd.f32 %v1385_v49, %v1384_v45 }
 0x25c   :  { %v1387_v54 = vrot.slane %v1386_v6, 1 }
 0x25e   :  { %v1388_v57 = vadd.f32 %v1387_v54, %v1386_v6 }
 0x267   :  { %v1329_v28 = vpop.f32.mrf.mxu1 }
 0x268   :  { %1350 = vmatpush.msra.mxu2 %v1329_v28 }
 0x269   :  { %1518 = vmatmul.msk.f32.vlgmr.msra.gmra.mxu2 %vm33_vm0, %v1329_v28 }
 0x2ec   :  { %v1352_v1 = vpop.f32.mrf.mxu2 }
 0x2ed   :  { %v1355_v37 = vsel %vm1281_vm3, %v1352_v1, 0.0 }
 0x2ee   :  { %v1356_v38 = vsel %vm33_vm0, %v1355_v37, 0.0 }
 0x2ef   :  { %1357 = vadd.xlane.f32.xlu2 %v1356_v38 }
 0x2f7   :  { %1368 = vadd.xlane.f32.xlu2 %v1270_v14 }
 0x362   :  { %v1358_v2 = vpop.xlane.xlu2 %1357 }
 0x363   :  { %v1359_v43 = vrot.slane %v1358_v2, 4 }
 0x365   :  { %v1360_v3 = vadd.f32 %v1359_v43, %v1358_v2 }
 0x367   :  { %v1361_v47 = vrot.slane %v1360_v3, 2 }
 0x369   :  { %v1362_v16 = vadd.f32 %v1361_v47, %v1360_v3 }
 0x36a   :  { %v1369_v48 = vpop.xlane.xlu2 %1368 }
 0x36b   :  { %v1370_v23 = vrot.slane %v1369_v48, 4  ;;  %v1363_v50 = vrot.slane %v1362_v16, 1 }
 0x36d   :  { %v1371_v51 = vadd.f32 %v1370_v23, %v1369_v48  ;;  %v1364_v52 = vadd.f32 %v1363_v50, %v1362_v16 }
 0x36f   :  { %v1372_v53 = vrot.slane %v1371_v51, 2  ;;  %1520 = vpush %v1364_v52 }
 0x371   :  { %v1373_v5 = vadd.f32 %v1372_v53, %v1371_v51 }
 0x373   :  { %v1374_v55 = vrot.slane %v1373_v5, 1 }
 0x375   :  { %v1375_v56 = vadd.f32 %v1374_v55, %v1373_v5 }
 0x377   :  { %1522 = vpush %v1375_v56 }
 0x378   :  { %1524 = vpush %v1388_v57 }
 0x3a0   :  { %s1521_s1 = spop %1520 }
 0x3a1   :  { %s1519_s22 = sadd.f32 -8.0, %s1521_s1 }
 0x3a3   :  { %s1394_s23 = smul.f32 0.0001, %s1519_s22  ;;  %v1399_v58 = vstv %s1519_s22 }
 0x3a4   :  { %s1392_s30 = smul.f32 20.0, %s1519_s22  ;;  %v1400_v59 = vsel %vm1398_vm4, %v1399_v58, 0.0 }
 0x3a5   :  { %s1395_s4 = smul.f32 %s1519_s22, %s1394_s23 }
 0x3a8   :  { %s1523_s24 = spop %1522 }
 0x3a9   :  { %s1377_s25 = smul.f32 0.5, %s1523_s24  ;;  %s1525_s26 = spop %1524 }
 0x3aa   :  { %s1390_s27 = smul.f32 0.05, %s1525_s26 }
 0x3ab   :  { %s1378_s28 = smul.f32 0.00048828125, %s1377_s25 }
 0x3ad   :  { %s1391_s29 = sadd.f32 %s1390_s27, %s1378_s28 }
 0x3af   :  { %s1393_s3 = sadd.f32 %s1392_s30, %s1391_s29 }
 0x3b1   :  { %s1396_s10 = sadd.f32 %s1395_s4, %s1393_s3 }
 0x3b3   :  { %v1401_v60 = vstv %s1396_s10 }
 0x3b4   :  { %v1402_v61 = vsel %vm1397_vm5, %v1401_v60, %v1400_v59 }
 0x3b5   :  { %1403 = vst [vmem:[#allocation3] sm:$0x1] %v1402_v61 }
 0x3b6   :  { %1414 = dma.vmem_to_hbm [thread:$0]  %s1410_s6, 16, %s1412_s9, [#allocation4]  }
 0x3b7   :  { %1558 = dma.done.wait [#allocation4], 16  }
 0x3b8   :  { %1559 = vsyncadd [#allocation4], 4294967280 }
 0x3b9   :  { %1419 = vsyncpa [#allocation4], 1 }

</bundles_post_ra>
